<compile_context>
chip_gen: v6e
topology: v6e:2x2x1
jax: 0.10.0
libtpu: 0.0.40
codegen_flags: <defaults>
</compile_context>

<pallas_src>
import numpy as np
import jax
import jax.numpy as jnp
from jax.experimental import pallas as pl
from jax.experimental.pallas import tpu as pltpu


# ----------------------------- Pallas kernel -------------------------------- #
def _rope_kernel(c_ref, s_ref, x_ref, o_ref):
    # c_ref/s_ref: (tile_N, D) ; x_ref: (H, tile_N, D) input dtype ; o_ref: (H, tile_N, D) f32
    x = x_ref[...].astype(jnp.float32)                 # (H, tn, D)
    d = x.shape[-1]
    # Pairwise swap of interleaved lanes:
    #   swap[..., 2k] = x[..., 2k+1] ; swap[..., 2k+1] = x[..., 2k]
    left = pltpu.roll(x, d - 1, 2)                     # left[..., i]  = x[..., (i + 1) % d]
    right = pltpu.roll(x, 1, 2)                        # right[..., i] = x[..., (i - 1) % d]
    lane = jax.lax.broadcasted_iota(jnp.int32, x.shape, 2)
    swap = jnp.where((lane & 1) == 0, left, right)
    # Tables broadcast across the head axis (read once per tile).
    c = c_ref[...].astype(jnp.float32)[None]           # (1, tn, D)
    s = s_ref[...].astype(jnp.float32)[None]
    # out[2k]   = cos*x[2k]   - sin*x[2k+1]
    # out[2k+1] = cos*x[2k+1] + sin*x[2k]              (sin table is pre-signed [-sin, +sin])
    o_ref[...] = x * c + swap * s


# --------------------------- tiling / VMEM sizing ---------------------------- #
def _vmem_budget_bytes():
    try:
        cap = pltpu.get_tpu_info().vmem_capacity_bytes   # 128 MiB v5e/v6e, 64 MiB/TC v7x
    except Exception:
        cap = 64 * 1024 * 1024                           # conservative default (v7x)
    return min(int(cap * 0.6), 96 * 1024 * 1024)


def _choose_tile_n(N, H, D, x_itemsize, tbl_itemsize, out_itemsize, budget):
    # Double-buffered per-sequence-row VMEM footprint: x + out blocks carry H heads, tables don't.
    per_row = 2 * (H * D * (x_itemsize + out_itemsize) + 2 * D * tbl_itemsize)
    cap = max(8, budget // max(per_row, 1))
    if N <= cap:
        return N                                         # whole sequence fits in one tile
    tile = (cap // 8) * 8
    for t in range(tile, 7, -8):                         # prefer an exact divisor (no ragged tail)
        if N % t == 0:
            return t
    return tile                                          # ragged tail handled by pl.cdiv grid


def rope_nd_forward(x, cos_full, sin_full):
    """x: (B, H, N, D); cos_full/sin_full: (B, N, D) rotary tables.
    Returns (B, H, N, D//2, 1, 2) float32 -- identical to the torch forward()."""
    B, H, N, D = x.shape
    assert cos_full.shape == (B, N, D) and sin_full.shape == (B, N, D)
    budget = _vmem_budget_bytes()
    tile_n = _choose_tile_n(N, H, D, x.dtype.itemsize, cos_full.dtype.itemsize, 4, budget)
    n_tiles = pl.cdiv(N, tile_n)

    out = pl.pallas_call(
        _rope_kernel,
        out_shape=jax.ShapeDtypeStruct((B, H, N, D), jnp.float32),
        grid=(B, n_tiles),
        in_specs=[
            pl.BlockSpec((None, tile_n, D), lambda b, n: (b, n, 0)),           # cos (bcast over H)
            pl.BlockSpec((None, tile_n, D), lambda b, n: (b, n, 0)),           # sin (bcast over H)
            pl.BlockSpec((None, H, tile_n, D), lambda b, n: (b, 0, n, 0)),     # x
        ],
        out_specs=pl.BlockSpec((None, H, tile_n, D), lambda b, n: (b, 0, n, 0)),
        compiler_params=pltpu.CompilerParams(
            dimension_semantics=("parallel", "parallel"),   # (B, N_tiles)
            vmem_limit_bytes=int(budget),
        ),
    )(cos_full, sin_full, x)
    return out.reshape(B, H, N, D // 2, 1, 2)


# ------------------------- parameter / coefficient glue ---------------------- #
def build_rotary_tables(position_ids, dims_per_axis, c=10000.0, table_dtype=jnp.float32):
    """Replicates compute_rotary_params / rope (in float64 like torch, in numpy).

    TODO(synk): the torch source has `for axis in num_axes:` which would raise at runtime;
    we implement the clearly intended `range(num_axes)`.
    Returns:
      cos_full, sin_full: (B, N, D) tables for the kernel
                          (cos duplicated per pair; sin with [-sin, +sin] interleave)
      coefficients:       (B, 1, N, D//2, 2, 2) float32 -- exact torch coefficients
    """
    position_ids = np.asarray(position_ids)
    B, N, num_axes = position_ids.shape
    assert num_axes == len(dims_per_axis)
    cos_parts, sin_parts = [], []
    for axis, dim in enumerate(dims_per_axis):
        assert dim % 2 == 0
        pos = position_ids[..., axis].astype(np.float64)              # (B, N)
        scale = np.arange(0, dim, 2, dtype=np.float64) / dim          # (dim//2,)
        omega = 1.0 / (c ** scale)
        ang = np.einsum('...n,d->...nd', pos, omega)                  # (B, N, dim//2)
        cos_parts.append(np.cos(ang))
        sin_parts.append(np.sin(ang))
    cos = np.concatenate(cos_parts, axis=-1)                          # (B, N, D//2) f64
    sin = np.concatenate(sin_parts, axis=-1)

    # Exact torch coefficients: stack([cos, -sin, sin, cos], -1) -> (..., 2, 2), unsqueeze(1)
    coeff = np.stack([cos, -sin, sin, cos], axis=-1).reshape(*cos.shape, 2, 2)
    coeff = coeff.astype(np.float32)[:, None]                         # (B,1,N,D//2,2,2)

    D = 2 * cos.shape[-1]
    cos_full = np.repeat(cos.astype(np.float32), 2, axis=-1)                    # (B,N,D)
    sin_full = np.stack([-sin, sin], axis=-1).reshape(B, N, D).astype(np.float32)
    return (jnp.asarray(cos_full, dtype=table_dtype),
            jnp.asarray(sin_full, dtype=table_dtype),
            jnp.asarray(coeff))


def forward_ref(x, coefficients):
    """Pure-JAX transcription of the torch forward() (f32 coefficients) for verification."""
    dim = x.shape[-1]
    xr = x.astype(jnp.float32).reshape(*x.shape[:-1], dim // 2, 1, 2)
    x_emb = coefficients[..., 0] * xr[..., 0] + coefficients[..., 1] * xr[..., 1]
    return x_emb.reshape(xr.shape)


def forward_ref_from_tables(x, cos_full, sin_full):
    """Pure-JAX reference using the SAME tables as the kernel (tight math check)."""
    B, H, N, D = x.shape
    xf = x.astype(jnp.float32)
    swap = xf.reshape(B, H, N, D // 2, 2)[..., ::-1].reshape(B, H, N, D)
    c = cos_full.astype(jnp.float32)[:, None]
    s = sin_full.astype(jnp.float32)[:, None]
    return (xf * c + swap * s).reshape(B, H, N, D // 2, 1, 2)


# ----------------------------------- main ------------------------------------ #
if __name__ == "__main__":
    dims_per_axis = [64, 64]           # 2-D RoPE (e.g. image patch rows/cols)
    D = sum(dims_per_axis)             # 128
    B, H, N = 2, 4, 16                 # N = 4x4 patch grid flattened

    key = jax.random.PRNGKey(0)
    x = jax.random.normal(key, (B, H, N, D), dtype=jnp.float32).astype(jnp.bfloat16)

    # deterministic 2-D position ids: (row, col) of a 4x4 grid, shared across batch
    side = 4
    ph, pw = np.meshgrid(np.arange(side), np.arange(side), indexing="ij")
    pos = np.stack([ph.reshape(-1), pw.reshape(-1)], axis=-1)          # (N, 2)
    position_ids = np.broadcast_to(pos[None], (B, N, 2)).copy()        # (B, N, 2)

    cos_full, sin_full, coefficients = build_rotary_tables(position_ids, dims_per_axis)

    out = rope_nd_forward(x, cos_full, sin_full)
    out = jax.block_until_ready(out)
    assert out.shape == (B, H, N, D // 2, 1, 2) and out.dtype == jnp.float32

    # Tight check: identical f32 tables, pure-JAX math (validates the kernel itself).
    ref_tbl = forward_ref_from_tables(x, cos_full, sin_full)
    np.testing.assert_allclose(np.asarray(out), np.asarray(ref_tbl), rtol=1e-6, atol=1e-6)

    # Semantics check vs the exact torch forward() (float32 coefficients).
    ref = forward_ref(x, coefficients)
    np.testing.assert_allclose(np.asarray(out), np.asarray(ref), rtol=1e-5, atol=1e-5)

    print("KERNEL_OK")
</pallas_src>

<mosaic_0001>
module attributes {stable_mosaic.version = 11 : i64} {
  func.func @_rope_kernel(%arg0: i32, %arg1: i32, %arg2: memref<1x16x128xf32, #tpu.memory_space<vmem>>, %arg3: memref<1x16x128xf32, #tpu.memory_space<vmem>>, %arg4: memref<1x4x16x128xbf16, #tpu.memory_space<vmem>>, %arg5: memref<1x4x16x128xf32, #tpu.memory_space<vmem>>) attributes {dimension_semantics = [#tpu.dimension_semantics<parallel>, #tpu.dimension_semantics<parallel>], iteration_bounds = array<i64: 2, 1>, scalar_prefetch = 0 : i64, scratch_operands = 0 : i64, tpu.core_type = #tpu.core_type<tc>, window_params = [{transform_indices = @transform_0, window_bounds = array<i64: 1, 16, 128>}, {transform_indices = @transform_1, window_bounds = array<i64: 1, 16, 128>}, {transform_indices = @transform_2, window_bounds = array<i64: 1, 4, 16, 128>}, {transform_indices = @transform_3, window_bounds = array<i64: 1, 4, 16, 128>}]} {
    %c0 = arith.constant 0 : index
    %c0_0 = arith.constant 0 : index
    %c0_1 = arith.constant 0 : index
    %c0_2 = arith.constant 0 : index
    %0 = vector.load %arg4[%c0, %c0_0, %c0_1, %c0_2] : memref<1x4x16x128xbf16, #tpu.memory_space<vmem>>, vector<1x4x16x128xbf16>
    %1 = vector.shape_cast %0 : vector<1x4x16x128xbf16> to vector<4x16x128xbf16>
    %2 = arith.extf %1 : vector<4x16x128xbf16> to vector<4x16x128xf32>
    %c127_i32 = arith.constant 127 : i32
    %3 = tpu.dynamic_rotate %2 by %c127_i32 dim 2 : vector<4x16x128xf32>, i32 -> vector<4x16x128xf32>
    %c1_i32 = arith.constant 1 : i32
    %4 = tpu.dynamic_rotate %2 by %c1_i32 dim 2 : vector<4x16x128xf32>, i32 -> vector<4x16x128xf32>
    %5 = tpu.iota {dimensions = array<i32: 2>} : vector<4x16x128xi32>
    %c1_i32_3 = arith.constant 1 : i32
    %6 = vector.broadcast %c1_i32_3 : i32 to vector<4x16x128xi32>
    %7 = arith.andi %5, %6 : vector<4x16x128xi32>
    %c0_i32 = arith.constant 0 : i32
    %8 = vector.broadcast %c0_i32 : i32 to vector<4x16x128xi32>
    %9 = arith.cmpi eq, %7, %8 : vector<4x16x128xi32>
    %10 = arith.select %9, %3, %4 : vector<4x16x128xi1>, vector<4x16x128xf32>
    %c0_4 = arith.constant 0 : index
    %c0_5 = arith.constant 0 : index
    %c0_6 = arith.constant 0 : index
    %11 = vector.load %arg2[%c0_4, %c0_5, %c0_6] : memref<1x16x128xf32, #tpu.memory_space<vmem>>, vector<1x16x128xf32>
    %12 = vector.shape_cast %11 : vector<1x16x128xf32> to vector<16x128xf32>
    %13 = vector.shape_cast %12 : vector<16x128xf32> to vector<1x16x128xf32>
    %c0_7 = arith.constant 0 : index
    %c0_8 = arith.constant 0 : index
    %c0_9 = arith.constant 0 : index
    %14 = vector.load %arg3[%c0_7, %c0_8, %c0_9] : memref<1x16x128xf32, #tpu.memory_space<vmem>>, vector<1x16x128xf32>
    %15 = vector.shape_cast %14 : vector<1x16x128xf32> to vector<16x128xf32>
    %16 = vector.shape_cast %15 : vector<16x128xf32> to vector<1x16x128xf32>
    %17 = vector.broadcast %13 : vector<1x16x128xf32> to vector<4x16x128xf32>
    %18 = arith.mulf %2, %17 : vector<4x16x128xf32>
    %19 = vector.broadcast %16 : vector<1x16x128xf32> to vector<4x16x128xf32>
    %20 = arith.mulf %10, %19 : vector<4x16x128xf32>
    %21 = arith.addf %18, %20 : vector<4x16x128xf32>
    %c0_10 = arith.constant 0 : index
    %c0_11 = arith.constant 0 : index
    %c0_12 = arith.constant 0 : index
    %c0_13 = arith.constant 0 : index
    %22 = vector.load %arg5[%c0_10, %c0_11, %c0_12, %c0_13] : memref<1x4x16x128xf32, #tpu.memory_space<vmem>>, vector<1x4x16x128xf32>
    %23 = vector.shape_cast %22 : vector<1x4x16x128xf32> to vector<4x16x128xf32>
    %24 = vector.shape_cast %21 : vector<4x16x128xf32> to vector<1x4x16x128xf32>
    tpu.vector_store %arg5[%c0_10, %c0_11, %c0_12, %c0_13], %24 {strides = array<i32>} : memref<1x4x16x128xf32, #tpu.memory_space<vmem>>, vector<1x4x16x128xf32>,
    return
  }
  func.func @transform_0(%arg0: i32, %arg1: i32) -> (i32, i32, i32) {
    %c0_i32 = arith.constant 0 : i32
    %c0_i32_0 = arith.constant 0 : i32
    return %arg0, %arg1, %c0_i32 : i32, i32, i32
  }
  func.func @transform_1(%arg0: i32, %arg1: i32) -> (i32, i32, i32) {
    %c0_i32 = arith.constant 0 : i32
    %c0_i32_0 = arith.constant 0 : i32
    return %arg0, %arg1, %c0_i32 : i32, i32, i32
  }
  func.func @transform_2(%arg0: i32, %arg1: i32) -> (i32, i32, i32, i32) {
    %c0_i32 = arith.constant 0 : i32
    %c0_i32_0 = arith.constant 0 : i32
    %c0_i32_1 = arith.constant 0 : i32
    return %arg0, %c0_i32, %arg1, %c0_i32_0 : i32, i32, i32, i32
  }
  func.func @transform_3(%arg0: i32, %arg1: i32) -> (i32, i32, i32, i32) {
    %c0_i32 = arith.constant 0 : i32
    %c0_i32_0 = arith.constant 0 : i32
    %c0_i32_1 = arith.constant 0 : i32
    return %arg0, %c0_i32, %arg1, %c0_i32_0 : i32, i32, i32, i32
  }
}

</mosaic_0001>

<bundles_post_ra>
// kernel: tpu_custom_call.1
= control target key start
LH: loop header
LB: loop body
LE: loop exit
PB: predicated region body
PF: predicated region fallthrough
CT: control target
= control target key end

     0   :  { %s1143_s0 = inlined_call_operand.hbm [shape: f32[2,16,128], index: 0, kind: input, shape index: {}]   ;;  %s1144_s1 = inlined_call_operand.hbm [shape: f32[2,16,128], index: 1, kind: input, shape index: {}]   ;;  %s1145_s2 = inlined_call_operand.hbm [shape: bf16[2,4,16,128], index: 2, kind: input, shape index: {}]   ;;  %s1146_s3 = inlined_call_operand.hbm [shape: f32[2,4,16,128], index: 3, kind: output, shape index: {}]  }
   0x1   :  { %1149 = sst [smem:[#allocation15_spill]] %s1144_s1 }
   0x2   :  { %8 = vsyncpa [#allocation3], 0 }
   0x3   :  { %10 = vsyncpa [#allocation3 + $0x1], 0 }
   0x4   :  { %11 = vsyncpa [#allocation6], 0 }
   0x5   :  { %13 = vsyncpa [#allocation6 + $0x1], 0 }
   0x6   :  { %14 = vsyncpa [#allocation4], 0 }
   0x7   :  { %16 = vsyncpa [#allocation4 + $0x1], 0  ;;  %s912_s12 = smov 0   ;;  %s914_s13 = smov 0  }
   0x8   :  { %s916_s14 = smov 0   ;;  %s918_s15 = smov 0  }
   0x9   :  { %s920_s16 = smov 0   ;;  %s922_s17 = smov 0  }
   0xa LB: > { %1150 = sst [smem:[#allocation12_spill]] %s866_s14  ;;  %s943_s18 = sadd.s32 4294967295, %s878_s17   ;;  %s878_s17 = sphi %s922_s17, %s22_s17   ;;  %s874_s16 = sphi %s920_s16, %s1169_s16   ;;  %s870_s15 = sphi %s918_s15, %s1168_s15   ;;  %s866_s14 = sphi %s916_s14, %s1164_s14   ;;  %s862_s13 = sphi %s914_s13, %s1167_s13   ;;  %s858_s12 = sphi %s912_s12, %s1166_s12  }
   0xb   : > { %s545_s19 = sadd.s32 4294967294, %s878_s17   ;;  %s34_s20 = sadd.s32 1, %s874_s16 }
   0xc   : > { %s43_s21 = sadd.s32 1, %s866_s14  ;;  %p36_p0 = scmp.ge.s32.totalorder %s34_s20, 2 }
   0xd   : > { %p50_p1 = scmp.ne.s32.totalorder %s866_s14, %s862_s13  ;;  %p51_p2 = scmp.eq.s32.totalorder %s878_s17, 0 }
   0xe   : > { %p56_p3 = scmp.ne.s32.totalorder %s862_s13, %s858_s12  ;;  %s1171_s20 = smov (%p36_p0, %s34_s20), 0 }
   0xf   : > { %1151 = sst [smem:[#allocation13_spill]] %s1171_s20  ;;  %p955_p4 = por %p51_p2, %p50_p1 }
  0x10   : > { %p57_p5 = scmp.eq.s32.totalorder %s943_s18, 0  ;;  %s38_s23 = ssub.s32 %s874_s16, %s1171_s20 }
  0x11   : > { %p138_p6 = scmp.eq.s32.totalorder %s943_s18, 1  ;;  %p41_p7 = scmp.eq.s32.totalorder %s38_s23, 0 }
  0x12   : > { %p963_p8 = por %p57_p5, %p56_p3  ;;  %p144_p10 = scmp.eq.s32.totalorder %s545_s19, 1 }
  0x13   : > { %p967_p9 = por %p138_p6, %p50_p1  ;;  %p612_p13 = scmp.lt.s32.totalorder %s878_s17, 2 }
  0x14   : > { %s972_s26 = scalar_select %p41_p7, %s866_s14, %s43_s21  }
  0x15   : > { %p974_p11 = por %p144_p10, %p56_p3  ;;  %s981_s28 = sand.u32 1, %s866_s14  }
  0x16   : > { %1155 = sst [smem:[#allocation14_spill]] %s972_s26  ;;  %s548_s29 = sshll.u32 %s981_s28, 4 }
  0x17   : > { %s567_s30 = sshll.u32 %s874_s16, 8  ;;  %p987_p0 = pnand %p612_p13, %p955_p4 }
  0x18   : > { %s187_s5 = sand.u32 1, %s878_s17   ;;  %s1158_s1 = sld [smem:[#allocation15_spill]] }
  0x19   : > { %s191_s9 = scalar_lea.vmem [#allocation5], %s548_s29  ;;  %p557_p1 = scmp.ge.s32.totalorder %s878_s17, 1 }
  0x1a   : > { %s200_s10 = sshll.u32 %s191_s9, 4  ;;  %p231_p2 = scmp.lt.s32.totalorder %s878_s17, 3  ;;  %s201_s10 = int_to_ptr.vmem [resolvable:$true] %s200_s10 }
  0x1b   : > { %s1001_s11 = scalar_lea.sflag [#allocation6], %s187_s5  ;;  %p712_p3 = pneg %p987_p0 }
  0x1c   : > { %s723_s19 = scalar_lea.vmem %s201_s10, 256  ;;  %s880_s21 = smov [#allocation5]  }
  0x1d   : > { %p724_p4 = scmp.ne.s32.totalorder %s201_s10, %s723_s19  ;;  %s728_s22 = sshll.u32 %s880_s21, 4  ;;  %s729_s22 = int_to_ptr.vmem [resolvable:$false] %s728_s22 }
  0x1e   : > { %s199_s8 = scalar_lea.hbm %s1158_s1, %s567_s30  ;;  %s730_s23 = scalar_lea.vmem %s729_s22, 512 }
  0x1f   : > { %p726_p5 = pnand %p724_p4, %p712_p3  ;;  %p731_p7 = scmp.lt.s32.totalorder %s201_s10, %s729_s22 }
  0x20   : > { %p732_p10 = scmp.lt.s32.totalorder %s730_s23, %s723_s19 }
  0x21   : > { %p727_p6 = pneg %p726_p5 }
  0x22   : > { %p733_p13 = por %p732_p10, %p731_p7 }
  0x24   : > { %p734_p12 = pnand %p733_p13, %p727_p6 }
  0x26   : > { %737 = shalt.err (!%p734_p12)
}
  0x27   : > { %s881_s6 = smov 128   ;;  %s882_s5 = smov 8  }
  0x28   : > { %604 = dma.hbm_to_vmem [thread:$0]  (!%p987_p0), %s199_s8, 256, %s201_s10, %s1001_s11, %s881_s6, %s881_s6, %s882_s5  }
  0x29   : > { %p1015_p4 = pnand %p557_p1, %p231_p2  ;;  %s176_s21 = scalar_lea.hbm %s1143_s0, %s567_s30 }
  0x2a   : > { %s168_s22 = scalar_lea.vmem [#allocation2], %s548_s29  ;;  %s554_s1 = sshll.u32 %s981_s28, 5 }
  0x2b   : > { %s177_s23 = sshll.u32 %s168_s22, 4  ;;  %s165_s20 = scalar_lea.sflag [#allocation3], %s981_s28  ;;  %s178_s23 = int_to_ptr.vmem [resolvable:$true] %s177_s23 }
  0x2c   : > { %s751_s26 = scalar_lea.vmem %s178_s23, 256  ;;  %s883_s8 = smov [#allocation2]  }
  0x2d   : > { %p752_p12 = scmp.ne.s32.totalorder %s178_s23, %s751_s26  ;;  %s756_s10 = sshll.u32 %s883_s8, 4  ;;  %s757_s10 = int_to_ptr.vmem [resolvable:$false] %s756_s10 }
  0x2e   : > { %s758_s14 = scalar_lea.vmem %s757_s10, 512  ;;  %p759_p2 = scmp.lt.s32.totalorder %s178_s23, %s757_s10 }
  0x2f   : > { %p754_p5 = pnand %p752_p12, %p712_p3  ;;  %p760_p6 = scmp.lt.s32.totalorder %s758_s14, %s751_s26 }
  0x31   : > { %p755_p1 = pneg %p754_p5  ;;  %p761_p7 = por %p760_p6, %p759_p2 }
  0x33   : > { %p762_p10 = pnand %p761_p7, %p755_p1 }
  0x35   : > { %765 = shalt.err (!%p762_p10)
}
  0x36   : > { %601 = dma.hbm_to_vmem [thread:$0]  (!%p987_p0), %s176_s21, 256, %s178_s23, %s165_s20, %s881_s6, %s881_s6, %s882_s5  }
  0x37   : > { %s569_s28 = sshll.u32 %s874_s16, 9  ;;  %s214_s29 = scalar_lea.vmem [#allocation7], %s554_s1 }
  0x38   : > { %s223_s30 = sshll.u32 %s214_s29, 4  ;;  %s222_s22 = scalar_lea.hbm %s1145_s2, %s569_s28  ;;  %s224_s30 = int_to_ptr.vmem [resolvable:$true] %s223_s30 }
  0x39   : > { %s779_s8 = scalar_lea.vmem %s224_s30, 512  ;;  %s884_s14 = smov [#allocation7]  }
  0x3a   : > { %p780_p13 = scmp.ne.s32.totalorder %s224_s30, %s779_s8  ;;  %s784_s26 = sshll.u32 %s884_s14, 4  ;;  %s785_s26 = int_to_ptr.vmem [resolvable:$false] %s784_s26 }
  0x3b   : > { %s786_s10 = scalar_lea.vmem %s785_s26, 1024  ;;  %p787_p1 = scmp.lt.s32.totalorder %s224_s30, %s785_s26 }
  0x3c   : > { %p782_p12 = pnand %p780_p13, %p712_p3  ;;  %p788_p2 = scmp.lt.s32.totalorder %s786_s10, %s779_s8 }
  0x3e   : > { %p783_p5 = pneg %p782_p12  ;;  %p789_p6 = por %p788_p2, %p787_p1 }
  0x40   : > { %p790_p7 = pnand %p789_p6, %p783_p5 }
  0x42   : > { %793 = shalt.err (!%p790_p7)
}
  0x43   : > { %s885_s1 = smov 64   ;;  %s886_s20 = smov 4  }
  0x44   : > { %607 = dma.hbm_to_vmem [thread:$0]  (!%p987_p0), %s222_s22, 512, %s224_s30, %s1001_s11, %s885_s1, %s885_s1, %s886_s20  }
  0x45   : > { %235 = sbr.rel (%p1015_p4) target bundleno = 234 (0xea), region = 32  ;;  %s1046_s6 = sand.u32 (!%p1015_p4), 1, %s862_s13  }
  0x46   : > { %s558_s5 = sshll.u32 (!%p1015_p4), %s1046_s6, 4  ;;  %s238_s21 = scalar_lea.sflag (!%p1015_p4), [#allocation3], %s1046_s6 }
  0x47   : > { %s1050_s23 = scalar_lea.vmem (!%p1015_p4), [#allocation2], %s558_s5 }
  0x4a   : > { %845 = dma.done.wait (%p963_p8), %s238_s21, 256  }
  0x4b   : > { %847 = vsyncadd (%p963_p8), %s238_s21, 4294967040  ;;  %s246_s4 = sand.u32 1, %s943_s18   ;;  %s1057_s7 = scalar_lea.vmem [#allocation5], %s558_s5 }
  0x4c   : > { %s247_s11 = scalar_lea.sflag [#allocation6], %s246_s4 }
  0x4d   : > { %849 = dma.done.wait (%p963_p8), %s247_s11, 768  }
  0x4e   : > { %851 = vsyncadd (%p963_p8), %s247_s11, 4294966528  ;;  %s560_s28 = sshll.u32 %s1046_s6, 5  ;;  %s887_s18 = smov 127   ;;  %v344_v16 = vlaneseq  ;;  %v357_v20 = vld [vmem:[%s1050_s23 + $0x8] sm:$0xff]  ;;  %v356_v22 = vld [vmem:[%s1050_s23] sm:$0xff] }
  0x4f   : > { %s259_s29 = scalar_lea.vmem [#allocation7], %s560_s28  ;;  %s888_s24 = smov 1   ;;  %v358_v40 = vld [vmem:[%s1057_s7] sm:$0xff]  ;;  %v359_v41 = vld [vmem:[%s1057_s7 + $0x8] sm:$0xff] }
  0x50   : > { %v588_v0 = vld [vmem:[%s259_s29 + $0x10] sm:$0xff]   ;;  %v572_v1 = vld [vmem:[%s259_s29] sm:$0xff]   ;;  %v589_v6 = vld [vmem:[%s259_s29 + $0x18] sm:$0xff]   ;;  %v345_v17 = vand.u32 127, %v344_v16  ;;  %s561_s30 = sshll.u32 %s1046_s6, 6  ;;  %s570_s9 = sshll.u32 %s870_s15, 10 }
  0x51   : > { %v581_v2 = vunpack.c.l.bf16 %v588_v0  ;;  %v582_v3 = vunpack.c.h.bf16 %v588_v0  ;;  %v573_v4 = vunpack.c.l.bf16 %v572_v1  ;;  %v574_v5 = vunpack.c.h.bf16 %v572_v1  ;;  %v587_v7 = vld [vmem:[%s259_s29 + $0x8] sm:$0xff]   ;;  %s291_s19 = scalar_lea.vmem [#allocation8], %s561_s30  ;;  %s1093_s14 = scalar_lea.hbm %s1146_s3, %s570_s9 }
  0x52   : > { %v585_v8 = vunpack.c.l.bf16 %v589_v6  ;;  %v586_v9 = vunpack.c.h.bf16 %v589_v6  ;;  %v577_v10 = vunpack.c.l.bf16 %v587_v7  ;;  %v578_v11 = vunpack.c.h.bf16 %v587_v7  ;;  %s408_s22 = sshll.u32 %s291_s19, 4  ;;  %s393_s26 = scalar_lea.sflag [#allocation4], %s1046_s6  ;;  %s1095_s22 = int_to_ptr.vmem [resolvable:$true] %s408_s22 }
  0x53   : > { %v680_v12 = vpack.i.bf16 %v582_v3, %v581_v2  ;;  %v670_v13 = vpack.i.bf16 %v574_v5, %v573_v4  ;;  %v346_v21 = vand.u32 1, %v345_v17  ;;  %v361_v25 = vmul.f32 %v574_v5, %v357_v20  ;;  %s794_s10 = scalar_lea.vmem %s1095_s22, 1024  ;;  %s889_s1 = smov [#allocation8]  }
  0x54   : > { %v685_v14 = vpack.i.bf16 %v586_v9, %v585_v8  ;;  %v675_v15 = vpack.i.bf16 %v578_v11, %v577_v10  ;;  %v360_v26 = vmul.f32 %v573_v4, %v356_v22  ;;  %v363_v28 = vmul.f32 %v578_v11, %v357_v20  ;;  %p795_p8 = scmp.ne.s32.totalorder %s1095_s22, %s794_s10  ;;  %s798_s20 = sshll.u32 %s889_s1, 4  ;;  %s799_s20 = int_to_ptr.vmem [resolvable:$false] %s798_s20 }
  0x55   : > { %681 = vrot.lane.b32.xlu1 %v680_v12, %s887_s18  ;;  %671 = vrot.lane.b32.xlu0 %v670_v13, %s887_s18  ;;  %vm1066_vm0 = vcmp.eq.s32.totalorder %v346_v21, 0  ;;  %v362_v29 = vmul.f32 %v577_v10, %v356_v22  ;;  %v366_v30 = vmul.f32 %v585_v8, %v356_v22  ;;  %v367_v31 = vmul.f32 %v586_v9, %v357_v20  ;;  %s800_s5 = scalar_lea.vmem %s799_s20, 2048  ;;  %p801_p4 = scmp.lt.s32.totalorder %s1095_s22, %s799_s20 }
  0x56   : > { %v364_v32 = vmul.f32 %v581_v2, %v356_v22  ;;  %v365_v33 = vmul.f32 %v582_v3, %v357_v20  ;;  %p796_p0 = pnand %p795_p8, %p967_p9  ;;  %p802_p10 = scmp.lt.s32.totalorder %s800_s5, %s794_s10 }
  0x58   : > { %p797_p3 = pneg %p796_p0  ;;  %p803_p13 = por %p802_p10, %p801_p4 }
  0x59   : > { %686 = vrot.lane.b32.xlu1 %v685_v14, %s887_s18  ;;  %676 = vrot.lane.b32.xlu0 %v675_v15, %s887_s18 }
  0x5a   : > { %p804_p12 = pnand %p803_p13, %p797_p3 }
  0x5d   : > { %696 = vrot.lane.b32.xlu1 %v675_v15, %s888_s24  ;;  %691 = vrot.lane.b32.xlu0 %v670_v13, %s888_s24 }
  0x61   : > { %706 = vrot.lane.b32.xlu1 %v685_v14, %s888_s24  ;;  %701 = vrot.lane.b32.xlu0 %v680_v12, %s888_s24 }
  0xc7   : > { %v682_v18 = vpop.permute.xlu1 %681  ;;  %v672_v19 = vpop.permute.xlu0 %671 }
  0xc8   : > { %v674_v34 = vunpack.i.h.bf16 %v672_v19  ;;  %v673_v35 = vunpack.i.l.bf16 %v672_v19  ;;  %v684_v46 = vunpack.i.h.bf16 %v682_v18  ;;  %v683_v47 = vunpack.i.l.bf16 %v682_v18 }
  0xcb   : > { %v687_v23 = vpop.permute.xlu1 %686  ;;  %v677_v24 = vpop.permute.xlu0 %676 }
  0xcc   : > { %v679_v36 = vunpack.i.h.bf16 %v677_v24  ;;  %v678_v37 = vunpack.i.l.bf16 %v677_v24  ;;  %v689_v48 = vunpack.i.h.bf16 %v687_v23  ;;  %v688_v49 = vunpack.i.l.bf16 %v687_v23 }
  0xcf   : > { %v697_v38 = vpop.permute.xlu1 %696  ;;  %v692_v39 = vpop.permute.xlu0 %691 }
  0xd0   : > { %v699_v42 = vunpack.i.h.bf16 %v697_v38  ;;  %v698_v43 = vunpack.i.l.bf16 %v697_v38  ;;  %v694_v44 = vunpack.i.h.bf16 %v692_v39  ;;  %v693_v45 = vunpack.i.l.bf16 %v692_v39 }
  0xd2   : > { %v350_v50 = vsel %vm1066_vm0, %v678_v37, %v698_v43  ;;  %v351_v51 = vsel %vm1066_vm0, %v679_v36, %v699_v42  ;;  %v348_v52 = vsel %vm1066_vm0, %v673_v35, %v693_v45  ;;  %v349_v53 = vsel %vm1066_vm0, %v674_v34, %v694_v44 }
  0xd3   : > { %v370_v54 = vmul.f32 %v358_v40, %v350_v50  ;;  %v371_v55 = vmul.f32 %v359_v41, %v351_v51  ;;  %v368_v56 = vmul.f32 %v358_v40, %v348_v52  ;;  %v369_v57 = vmul.f32 %v359_v41, %v349_v53  ;;  %v707_v58 = vpop.permute.xlu1 %706  ;;  %v702_v59 = vpop.permute.xlu0 %701 }
  0xd4   : > { %v709_v60 = vunpack.i.h.bf16 %v707_v58  ;;  %v708_v61 = vunpack.i.l.bf16 %v707_v58  ;;  %v704_v62 = vunpack.i.h.bf16 %v702_v59  ;;  %v703_v63 = vunpack.i.l.bf16 %v702_v59 }
  0xd5   : > { %v378_v0 = vadd.f32 %v370_v54, %v362_v29  ;;  %v379_v1 = vadd.f32 %v371_v55, %v363_v28  ;;  %v376_v2 = vadd.f32 %v368_v56, %v360_v26  ;;  %v377_v3 = vadd.f32 %v369_v57, %v361_v25 }
  0xd6   : > { %v355_v4 = vsel %vm1066_vm0, %v689_v48, %v709_v60  ;;  %v354_v5 = vsel %vm1066_vm0, %v688_v49, %v708_v61  ;;  %v353_v6 = vsel %vm1066_vm0, %v684_v46, %v704_v62  ;;  %v352_v7 = vsel %vm1066_vm0, %v683_v47, %v703_v63 }
  0xd7   : > { %386 = vst [vmem:[%s291_s19 + $0x10] sm:$0xff] %v378_v0  ;;  %387 = vst [vmem:[%s291_s19 + $0x18] sm:$0xff] %v379_v1  ;;  %v375_v8 = vmul.f32 %v359_v41, %v355_v4  ;;  %v374_v9 = vmul.f32 %v358_v40, %v354_v5  ;;  %v373_v10 = vmul.f32 %v359_v41, %v353_v6 }
  0xd8   : > { %384 = vst [vmem:[%s291_s19] sm:$0xff] %v376_v2  ;;  %385 = vst [vmem:[%s291_s19 + $0x8] sm:$0xff] %v377_v3  ;;  %v372_v11 = vmul.f32 %v358_v40, %v352_v7 }
  0xd9   : > { %v383_v12 = vadd.f32 %v375_v8, %v367_v31  ;;  %v382_v13 = vadd.f32 %v374_v9, %v366_v30  ;;  %v381_v14 = vadd.f32 %v373_v10, %v365_v33 }
  0xda   : > { %v380_v15 = vadd.f32 %v372_v11, %v364_v32 }
  0xdb   : > { %391 = vst [vmem:[%s291_s19 + $0x38] sm:$0xff] %v383_v12  ;;  %390 = vst [vmem:[%s291_s19 + $0x30] sm:$0xff] %v382_v13 }
  0xdc   : > { %389 = vst [vmem:[%s291_s19 + $0x28] sm:$0xff] %v381_v14  ;;  %388 = vst [vmem:[%s291_s19 + $0x20] sm:$0xff] %v380_v15 }
  0xdd   : > { %807 = shalt.err (!%p804_p12)
}
  0xde   : > { %s808_s21 = scalar_lea.hbm %s1093_s14, 1024  ;;  %s812_s11 = scalar_lea.hbm %s1146_s3, 2048 }
  0xdf   : > { %p809_p5 = scmp.ne.s32.totalorder %s1093_s14, %s808_s21  ;;  %p813_p6 = scmp.lt.s32.totalorder %s1093_s14, %s1146_s3 }
  0xe0   : > { %p814_p7 = scmp.lt.s32.totalorder %s812_s11, %s808_s21 }
  0xe1   : > { %p810_p1 = pnand %p809_p5, %p967_p9 }
  0xe2   : > { %p815_p8 = por %p814_p7, %p813_p6 }
  0xe3   : > { %p811_p2 = pneg %p810_p1 }
  0xe5   : > { %p816_p0 = pnand %p815_p8, %p811_p2 }
  0xe7   : > { %819 = shalt.err (!%p816_p0)
}
  0xe8   : > { %s890_s29 = smov 128   ;;  %s891_s18 = smov 8  }
  0xe9   : > { %596 = dma.vmem_to_hbm [thread:$0]  (%p967_p9), %s1095_s22, 1024, %s1093_s14, %s393_s26, %s890_s29, %s890_s29, %s891_s18  }
  0xea PF: > { %s423_s24 = sand.u32 1, %s858_s12   ;;  %p1162_p3 = scmp.ge.s32.totalorder %s878_s17, 2 }
  0xeb   : > { %s424_s30 = scalar_lea.sflag [#allocation4], %s423_s24 }
  0xec   : > { %p609_p4 = pnand %p1162_p3, %p974_p11 }
  0xee   : > { %p610_p10 = pneg %p609_p4 }
  0xf0   : > { %853 = dma.done.wait (%p610_p10), %s424_s30, 1024  }
  0xf1   : > { %855 = vsyncadd (%p610_p10), %s424_s30, 4294966272  ;;  %s22_s17 = sadd.s32 1, %s878_s17   ;;  %s1163_s9 = sld [smem:[#allocation12_spill]] }
  0xf2   : > { %p19_p13 = scmp.ge.s32.totalorder %s22_s17, 4   ;;  %s1164_s14 = sld [smem:[#allocation14_spill]] }
  0xf3   : > { %s1165_s25 = sld [smem:[#allocation13_spill]]  ;;  %s1166_s12 = smov %s862_s13 }
  0xf4   : > { %s1168_s15 = smov %s874_s16 }
  0xf5   :  { %21 = sbr.rel (!%p19_p13) target bundleno = 10 (0xa), region = 101 }
  0xf7   : > { %s1167_s13 = smov %s1163_s9 }
  0xf9   : > { %s1169_s16 = smov %s1165_s25 }
  0xfa   :  { %429 = vsyncpa [#allocation3], 1 }
  0xfb   :  { %431 = vsyncpa [#allocation3 + $0x1], 1 }
  0xfc   :  { %432 = vsyncpa [#allocation6], 1 }
  0xfd   :  { %434 = vsyncpa [#allocation6 + $0x1], 1 }
  0xfe   :  { %435 = vsyncpa [#allocation4], 1 }
  0xff   :  { %437 = vsyncpa [#allocation4 + $0x1], 1 }

</bundles_post_ra>
